<compile_context>
chip_gen: v7x
topology: tpu7x:2x2x1
jax: 0.10.0
libtpu: 0.0.40
codegen_flags: <defaults>
</compile_context>

<pallas_src>
import functools

import jax
import jax.numpy as jnp
from jax.experimental import pallas as pl
from jax.experimental.pallas import tpu as pltpu

LN_EPS = 1e-5  # PyTorch nn.LayerNorm default


def _round_up(x, m):
    return (x + m - 1) // m * m


# ----------------------------- Pallas kernel -------------------------------
def spt_kernel(x_ref, w_ref, b_ref, g_ref, pe_ref, o_ref, *, e_true):
    # x_ref:  (TM, K)      bf16 patchified rows (row = one patch of one image)
    # w_ref:  (K, Epad)    bf16 projection weight (zero-padded lanes)
    # b_ref:  (1, Epad)    f32 projection bias (zero-padded lanes)
    # g_ref:  (1, Epad)    f32 LayerNorm gamma (zero-padded lanes)
    # pe_ref: (TM, Epad)   f32 (LayerNorm beta + positional encoding) per row
    # o_ref:  (TM, Epad)   f32 output
    y = jnp.dot(x_ref[...], w_ref[...], preferred_element_type=jnp.float32)
    y = y + b_ref[...]                                   # pad lanes stay exactly 0

    e_pad = y.shape[-1]
    inv_e = 1.0 / e_true
    mean = jnp.sum(y, axis=-1, keepdims=True) * inv_e    # pad lanes contribute 0
    centered = y - mean
    if e_pad != e_true:
        # Zero the padded lanes so they don't pollute the variance.
        lane = jax.lax.broadcasted_iota(jnp.int32, y.shape, dimension=1)
        centered = jnp.where(lane < e_true, centered, 0.0)
    var = jnp.sum(centered * centered, axis=-1, keepdims=True) * inv_e
    y_norm = centered * jax.lax.rsqrt(var + LN_EPS)

    o_ref[...] = (y_norm * g_ref[...] + pe_ref[...]).astype(o_ref.dtype)


# ------------------------------ JAX wrapper ---------------------------------
def shifted_patch_tokenization(image, params, patch_size, *, row_tile=256):
    """image: (B, C, H, W) float32. Returns (B, num_patches + 1, embed_dim).

    row_tile: rows of the flattened (B*P) dim per grid step. 256 is a good
    default for v6e/v7x; 128 may be preferable on v5e.
    """
    B, C, H, W = image.shape
    pw, ph = patch_size
    # Mirrors the module: Conv2d(kernel_size=(patch_width, patch_height)),
    # i.e. kH = patch_width, kW = patch_height (the module conflates W/H for
    # non-square patches; square patches are the supported case).
    kH, kW = pw, ph
    dx, dy = pw // 2, ph // 2
    E = params["b"].shape[-1]
    S = 5                                   # original + 4 shifts
    oH, oW = H // kH, W // kW
    P = oH * oW
    K = S * C * kH * kW
    M = B * P

    # ---- patchified activation (M, K) from ONE padded image (no concat of
    # 5 full-size shifted copies). K order = (shift, channel, u, v), matching
    # the PyTorch conv-weight flatten with channel order
    # [orig, left-up, right-up, left-down, right-down].
    padded = jnp.pad(image, ((0, 0), (0, 0), (dy, dy), (dx, dx)))
    # (y0, x0) window offsets reproducing torchvision affine zero-fill shifts:
    #   identity, left-up, right-up, left-down, right-down
    offs = [(dy, dx), (2 * dy, 2 * dx), (2 * dy, 0), (0, 2 * dx), (0, 0)]
    views = jnp.stack(
        [padded[:, :, y0:y0 + H, x0:x0 + W] for (y0, x0) in offs], axis=1
    )                                                        # (B, S, C, H, W)
    x = views.reshape(B, S, C, oH, kH, oW, kW)
    x = x.transpose(0, 3, 5, 1, 2, 4, 6).reshape(M, K)       # (M, K)
    x = x.astype(jnp.bfloat16)                               # halve HBM stream

    # ---- tiling / padding for lane-dense, sublane-aligned blocks
    TM = min(row_tile, _round_up(M, 16))                     # bf16 sublane align
    Mpad = _round_up(M, TM)
    Epad = _round_up(E, 128)                                 # lane-dense output

    x = jnp.pad(x, ((0, Mpad - M), (0, 0)))
    w = jnp.pad(params["w"].astype(jnp.bfloat16), ((0, 0), (0, Epad - E)))
    b = jnp.pad(params["b"].reshape(1, E).astype(jnp.float32),
                ((0, 0), (0, Epad - E)))
    g = jnp.pad(params["gamma"].reshape(1, E).astype(jnp.float32),
                ((0, 0), (0, Epad - E)))
    # Fold LayerNorm beta + per-patch positional encoding into one row tensor.
    pe_beta = params["pos_enc"][0, 1:, :] + params["beta"].reshape(1, E)   # (P, E)
    pe_rows = jnp.tile(pe_beta, (B, 1)).astype(jnp.float32)                # (M, E)
    pe_rows = jnp.pad(pe_rows, ((0, Mpad - M), (0, Epad - E)))

    grid = (Mpad // TM,)
    kernel = functools.partial(spt_kernel, e_true=E)

    cost = pl.CostEstimate(
        flops=2 * Mpad * K * Epad,
        transcendentals=Mpad,
        bytes_accessed=(Mpad * K * 2 + K * Epad * 2 + 2 * Epad * 4
                        + 2 * Mpad * Epad * 4),
    )

    out = pl.pallas_call(
        kernel,
        out_shape=jax.ShapeDtypeStruct((Mpad, Epad), jnp.float32),
        grid_spec=pltpu.PrefetchScalarGridSpec(
            num_scalar_prefetch=0,
            grid=grid,
            in_specs=[
                pl.BlockSpec((TM, K), lambda i: (i, 0)),      # x rows
                pl.BlockSpec((K, Epad), lambda i: (0, 0)),    # weight (resident)
                pl.BlockSpec((1, Epad), lambda i: (0, 0)),    # bias
                pl.BlockSpec((1, Epad), lambda i: (0, 0)),    # gamma
                pl.BlockSpec((TM, Epad), lambda i: (i, 0)),   # beta + pos-enc rows
            ],
            out_specs=pl.BlockSpec((TM, Epad), lambda i: (i, 0)),
        ),
        compiler_params=pltpu.CompilerParams(
            dimension_semantics=("parallel",),
            vmem_limit_bytes=32 * 1024 * 1024,
        ),
        cost_estimate=cost,
    )(x, w, b, g, pe_rows)

    patch_tokens = out[:M, :E].reshape(B, P, E)

    # CLS row: cls_token + positional_encoding[:, 0, :]  (no LayerNorm).
    cls_row = (params["cls"][0, 0, :] + params["pos_enc"][0, 0, :]).reshape(1, 1, E)
    cls_row = jnp.broadcast_to(cls_row, (B, 1, E))
    return jnp.concatenate([cls_row, patch_tokens], axis=1)   # (B, P+1, E)


# --------------------------- Pure-JAX reference ------------------------------
def _translate(img, tdx, tdy):
    """out[..., y, x] = img[..., y - tdy, x - tdx], zero fill (torchvision
    affine: positive tdx -> shift right, positive tdy -> shift down)."""
    B, C, H, W = img.shape
    py, px = abs(tdy), abs(tdx)
    padded = jnp.pad(img, ((0, 0), (0, 0), (py, py), (px, px)))
    y0 = py - tdy
    x0 = px - tdx
    return padded[:, :, y0:y0 + H, x0:x0 + W]


def reference(image, params, patch_size, matmul_dtype=jnp.float32):
    """PyTorch-equivalent math (translate copies + concat + patchify)."""
    B, C, H, W = image.shape
    pw, ph = patch_size
    kH, kW = pw, ph
    dx, dy = pw // 2, ph // 2
    E = params["b"].shape[-1]
    shifts = [
        image,
        _translate(image, -dx, -dy),   # left-up
        _translate(image, +dx, -dy),   # right-up
        _translate(image, -dx, +dy),   # left-down
        _translate(image, +dx, +dy),   # right-down
    ]
    cat = jnp.concatenate(shifts, axis=1)
    TC = 5 * C
    oH, oW = H // kH, W // kW
    P = oH * oW
    K = TC * kH * kW
    x = cat.reshape(B, TC, oH, kH, oW, kW).transpose(0, 2, 4, 1, 3, 5).reshape(B, P, K)
    y = jnp.dot(x.astype(matmul_dtype), params["w"].astype(matmul_dtype),
                preferred_element_type=jnp.float32) + params["b"]
    mean = y.mean(-1, keepdims=True)
    var = ((y - mean) ** 2).mean(-1, keepdims=True)
    y = (y - mean) / jnp.sqrt(var + LN_EPS) * params["gamma"] + params["beta"]
    cls = jnp.broadcast_to(params["cls"], (B, 1, E))
    return jnp.concatenate([cls, y], axis=1) + params["pos_enc"]


if __name__ == "__main__":
    # Small shapes consistent with the module:
    # batch=2, in_channels=4, image=16x16, patch=4x4, embed_dim=32
    B, C, Himg, Wimg = 2, 4, 16, 16
    patch_size = (4, 4)
    embed_dim = 32
    total_channels = C * 5
    P = (Wimg // patch_size[0]) * (Himg // patch_size[1])   # 16
    K = total_channels * patch_size[0] * patch_size[1]      # 320

    key = jax.random.PRNGKey(0)
    k_img, k_w, k_b, k_g, k_be, k_cls, k_pe = jax.random.split(key, 7)

    image = jax.random.normal(k_img, (B, C, Himg, Wimg), dtype=jnp.float32)

    # Conv weight (E, 5C, kH, kW) flattened to (K, E) with K = (c_total, u, v).
    conv_w = 0.05 * jax.random.normal(
        k_w, (embed_dim, total_channels, patch_size[0], patch_size[1]),
        dtype=jnp.float32)
    params = {
        "w": conv_w.reshape(embed_dim, K).T,                              # (K, E)
        "b": 0.05 * jax.random.normal(k_b, (embed_dim,), dtype=jnp.float32),
        "gamma": 1.0 + 0.05 * jax.random.normal(k_g, (embed_dim,), dtype=jnp.float32),
        "beta": 0.05 * jax.random.normal(k_be, (embed_dim,), dtype=jnp.float32),
        "cls": 0.05 * jax.random.normal(k_cls, (1, 1, embed_dim), dtype=jnp.float32),
        "pos_enc": 0.05 * jax.random.normal(k_pe, (1, P + 1, embed_dim),
                                            dtype=jnp.float32),
    }

    out = shifted_patch_tokenization(image, params, patch_size)
    out = jax.block_until_ready(out)
    assert out.shape == (B, P + 1, embed_dim), out.shape

    # Tight check against a reference whose matmul also uses bf16 inputs with
    # f32 accumulation (isolates the kernel's structure from bf16 rounding).
    ref_bf16 = jax.block_until_ready(
        reference(image, params, patch_size, matmul_dtype=jnp.bfloat16))
    assert jnp.allclose(out, ref_bf16, atol=2e-3, rtol=2e-3), \
        float(jnp.max(jnp.abs(out - ref_bf16)))

    # Looser check against the full-f32 PyTorch-equivalent reference (covers
    # the bf16 matmul rounding on the dominant stream).
    ref_f32 = jax.block_until_ready(
        reference(image, params, patch_size, matmul_dtype=jnp.float32))
    assert jnp.allclose(out, ref_f32, atol=5e-2, rtol=5e-2), \
        float(jnp.max(jnp.abs(out - ref_f32)))

    print("KERNEL_OK")
</pallas_src>

<mosaic_0001>
module attributes {stable_mosaic.version = 11 : i64} {
  func.func @spt_kernel(%arg0: i32, %arg1: memref<32x320xbf16, #tpu.memory_space<vmem>>, %arg2: memref<320x128xbf16, #tpu.memory_space<vmem>>, %arg3: memref<1x128xf32, #tpu.memory_space<vmem>>, %arg4: memref<1x128xf32, #tpu.memory_space<vmem>>, %arg5: memref<32x128xf32, #tpu.memory_space<vmem>>, %arg6: memref<32x128xf32, #tpu.memory_space<vmem>>) attributes {dimension_semantics = [#tpu.dimension_semantics<parallel>], iteration_bounds = array<i64: 1>, scalar_prefetch = 0 : i64, scratch_operands = 0 : i64, tpu.core_type = #tpu.core_type<tc>, window_params = [{transform_indices = @transform_0, window_bounds = array<i64: 32, 320>}, {pipeline_mode = #tpu.pipeline_mode<synchronous>, transform_indices = @transform_1, window_bounds = array<i64: 320, 128>}, {pipeline_mode = #tpu.pipeline_mode<synchronous>, transform_indices = @transform_2, window_bounds = array<i64: 1, 128>}, {pipeline_mode = #tpu.pipeline_mode<synchronous>, transform_indices = @transform_3, window_bounds = array<i64: 1, 128>}, {transform_indices = @transform_4, window_bounds = array<i64: 32, 128>}, {transform_indices = @transform_5, window_bounds = array<i64: 32, 128>}]} {
    %c0 = arith.constant 0 : index
    %c0_0 = arith.constant 0 : index
    %0 = vector.load %arg1[%c0, %c0_0] : memref<32x320xbf16, #tpu.memory_space<vmem>>, vector<32x320xbf16>
    %c0_1 = arith.constant 0 : index
    %c0_2 = arith.constant 0 : index
    %1 = vector.load %arg2[%c0_1, %c0_2] : memref<320x128xbf16, #tpu.memory_space<vmem>>, vector<320x128xbf16>
    %cst = arith.constant dense<0.000000e+00> : vector<32x128xf32>
    %2 = tpu.matmul %0, %1, %cst {dimension_numbers = #tpu.dot_dimension_numbers<[1], [0], [0], [1], [0, 0, 1, 1], [], []>} : vector<32x320xbf16>, vector<320x128xbf16>, vector<32x128xf32> -> vector<32x128xf32>
    %c0_3 = arith.constant 0 : index
    %c0_4 = arith.constant 0 : index
    %3 = vector.load %arg3[%c0_3, %c0_4] : memref<1x128xf32, #tpu.memory_space<vmem>>, vector<1x128xf32>
    %4 = vector.broadcast %3 : vector<1x128xf32> to vector<32x128xf32>
    %5 = arith.addf %2, %4 : vector<32x128xf32>
    %cst_5 = arith.constant dense<0.000000e+00> : vector<32xf32>
    %6 = vector.multi_reduction <add>, %5, %cst_5 [1] : vector<32x128xf32> to vector<32xf32>
    %7 = vector.shape_cast %6 : vector<32xf32> to vector<32x1xf32>
    %cst_6 = arith.constant 3.125000e-02 : f32
    %8 = vector.broadcast %cst_6 : f32 to vector<32x1xf32>
    %9 = arith.mulf %7, %8 : vector<32x1xf32>
    %10 = vector.broadcast %9 : vector<32x1xf32> to vector<32x128xf32>
    %11 = arith.subf %5, %10 : vector<32x128xf32>
    %12 = tpu.iota {dimensions = array<i32: 1>} : vector<32x128xi32>
    %c32_i32 = arith.constant 32 : i32
    %13 = vector.broadcast %c32_i32 : i32 to vector<32x128xi32>
    %14 = arith.cmpi slt, %12, %13 : vector<32x128xi32>
    %cst_7 = arith.constant 0.000000e+00 : f32
    %15 = vector.broadcast %cst_7 : f32 to vector<32x128xf32>
    %16 = arith.select %14, %11, %15 : vector<32x128xi1>, vector<32x128xf32>
    %17 = arith.mulf %16, %16 : vector<32x128xf32>
    %cst_8 = arith.constant dense<0.000000e+00> : vector<32xf32>
    %18 = vector.multi_reduction <add>, %17, %cst_8 [1] : vector<32x128xf32> to vector<32xf32>
    %19 = vector.shape_cast %18 : vector<32xf32> to vector<32x1xf32>
    %cst_9 = arith.constant 3.125000e-02 : f32
    %20 = vector.broadcast %cst_9 : f32 to vector<32x1xf32>
    %21 = arith.mulf %19, %20 : vector<32x1xf32>
    %cst_10 = arith.constant 9.99999974E-6 : f32
    %22 = vector.broadcast %cst_10 : f32 to vector<32x1xf32>
    %23 = arith.addf %21, %22 : vector<32x1xf32>
    %24 = math.rsqrt %23 : vector<32x1xf32>
    %25 = vector.broadcast %24 : vector<32x1xf32> to vector<32x128xf32>
    %26 = arith.mulf %16, %25 : vector<32x128xf32>
    %c0_11 = arith.constant 0 : index
    %c0_12 = arith.constant 0 : index
    %27 = vector.load %arg4[%c0_11, %c0_12] : memref<1x128xf32, #tpu.memory_space<vmem>>, vector<1x128xf32>
    %28 = vector.broadcast %27 : vector<1x128xf32> to vector<32x128xf32>
    %29 = arith.mulf %26, %28 : vector<32x128xf32>
    %c0_13 = arith.constant 0 : index
    %c0_14 = arith.constant 0 : index
    %30 = vector.load %arg5[%c0_13, %c0_14] : memref<32x128xf32, #tpu.memory_space<vmem>>, vector<32x128xf32>
    %31 = arith.addf %29, %30 : vector<32x128xf32>
    %c0_15 = arith.constant 0 : index
    %c0_16 = arith.constant 0 : index
    %32 = vector.load %arg6[%c0_15, %c0_16] : memref<32x128xf32, #tpu.memory_space<vmem>>, vector<32x128xf32>
    tpu.vector_store %arg6[%c0_15, %c0_16], %31 {strides = array<i32>} : memref<32x128xf32, #tpu.memory_space<vmem>>, vector<32x128xf32>,
    return
  }
  func.func @transform_0(%arg0: i32) -> (i32, i32) {
    %c0_i32 = arith.constant 0 : i32
    %c0_i32_0 = arith.constant 0 : i32
    return %arg0, %c0_i32 : i32, i32
  }
  func.func @transform_1(%arg0: i32) -> (i32, i32) {
    %c0_i32 = arith.constant 0 : i32
    %c0_i32_0 = arith.constant 0 : i32
    %c0_i32_1 = arith.constant 0 : i32
    return %c0_i32, %c0_i32_0 : i32, i32
  }
  func.func @transform_2(%arg0: i32) -> (i32, i32) {
    %c0_i32 = arith.constant 0 : i32
    %c0_i32_0 = arith.constant 0 : i32
    %c0_i32_1 = arith.constant 0 : i32
    return %c0_i32, %c0_i32_0 : i32, i32
  }
  func.func @transform_3(%arg0: i32) -> (i32, i32) {
    %c0_i32 = arith.constant 0 : i32
    %c0_i32_0 = arith.constant 0 : i32
    %c0_i32_1 = arith.constant 0 : i32
    return %c0_i32, %c0_i32_0 : i32, i32
  }
  func.func @transform_4(%arg0: i32) -> (i32, i32) {
    %c0_i32 = arith.constant 0 : i32
    %c0_i32_0 = arith.constant 0 : i32
    return %arg0, %c0_i32 : i32, i32
  }
  func.func @transform_5(%arg0: i32) -> (i32, i32) {
    %c0_i32 = arith.constant 0 : i32
    %c0_i32_0 = arith.constant 0 : i32
    return %arg0, %c0_i32 : i32, i32
  }
}

</mosaic_0001>

<bundles_post_ra>
// kernel: tpu_custom_call.1
= control target key start
LH: loop header
LB: loop body
LE: loop exit
PB: predicated region body
PF: predicated region fallthrough
CT: control target
= control target key end

     0   :  { %10 = vsyncpa [#allocation3], 0  ;;  %s785_s0 = inlined_call_operand.hbm [shape: bf16[32,320], index: 0, kind: input, shape index: {}]   ;;  %s786_s1 = inlined_call_operand.hbm [shape: bf16[320,128], index: 1, kind: input, shape index: {}]   ;;  %s787_s2 = inlined_call_operand.vmem [shape: f32[1,128], index: 2, kind: input, shape index: {}]   ;;  %s788_s3 = inlined_call_operand.vmem [shape: f32[1,128], index: 3, kind: input, shape index: {}]   ;;  %s789_s4 = inlined_call_operand.hbm [shape: f32[32,128], index: 4, kind: input, shape index: {}]   ;;  %s790_s5 = inlined_call_operand.hbm [shape: f32[32,128], index: 5, kind: output, shape index: {}]  }
   0x1   :  { %11 = vsyncpa [#allocation6], 0 }
   0x2   :  { %12 = vsyncpa [#allocation4], 0  ;;  %s681_s18 = smov [#allocation5]   ;;  %s587_s22 = scalar_lea.hbm %s786_s1, 2560 }
   0x3   :  { %s30_s19 = sshll.u32 %s681_s18, 4  ;;  %p588_p0 = scmp.ne.s32.totalorder %s786_s1, %s587_s22  ;;  %s31_s19 = int_to_ptr.vmem [resolvable:$true] %s30_s19 }
   0x4   :  { %p591_p1 = scmp.lt.u32.totalorder %s587_s22, %s786_s1 }
   0x6   :  { %p593_p2 = pnand %p591_p1, %p588_p0 }
   0x8   :  { %596 = shalt.err (!%p593_p2)
}
   0x9   :  { %s597_s27 = scalar_lea.vmem %s31_s19, 2560  ;;  %p602_p4 = scmp.lt.s32.totalorder %s31_s19, %s31_s19 }
   0xa   :  { %p598_p3 = scmp.ne.s32.totalorder %s31_s19, %s597_s27  ;;  %p603_p5 = scmp.lt.s32.totalorder %s597_s27, %s597_s27 }
   0xc   :  { %p604_p6 = por %p603_p5, %p602_p4 }
   0xe   :  { %p605_p7 = pnand %p604_p6, %p598_p3 }
  0x10   :  { %608 = shalt.err (!%p605_p7)
}
  0x11   :  { %s682_s28 = smov 64   ;;  %s683_s29 = smov 4  }
  0x12   :  { %36 = dma.hbm_to_vmem [thread:$0]  %s786_s1, 2560, %s31_s19, [#allocation6], %s682_s28, %s682_s28, %s683_s29  }
  0x13   :  { %s684_s7 = smov [#allocation2]   ;;  %s609_s11 = scalar_lea.hbm %s785_s0, 768 }
  0x14   :  { %s18_s8 = sshll.u32 %s684_s7, 4  ;;  %p610_p8 = scmp.ne.s32.totalorder %s785_s0, %s609_s11  ;;  %s19_s8 = int_to_ptr.vmem [resolvable:$true] %s18_s8 }
  0x15   :  { %p613_p9 = scmp.lt.u32.totalorder %s609_s11, %s785_s0 }
  0x17   :  { %p615_p10 = pnand %p613_p9, %p610_p8 }
  0x19   :  { %618 = shalt.err (!%p615_p10)
}
  0x1a   :  { %s619_s16 = scalar_lea.vmem %s19_s8, 768  ;;  %p624_p12 = scmp.lt.s32.totalorder %s19_s8, %s19_s8 }
  0x1b   :  { %p620_p11 = scmp.ne.s32.totalorder %s19_s8, %s619_s16  ;;  %p625_p13 = scmp.lt.s32.totalorder %s619_s16, %s619_s16 }
  0x1d   :  { %p626_p0 = por %p625_p13, %p624_p12 }
  0x1f   :  { %p627_p1 = pnand %p626_p0, %p620_p11 }
  0x21   :  { %630 = shalt.err (!%p627_p1)
}
  0x22   :  { %s685_s1 = smov 192   ;;  %s686_s17 = smov 12  }
  0x23   :  { %24 = dma.hbm_to_vmem [thread:$0]  %s785_s0, 768, %s19_s8, [#allocation3], %s685_s1, %s685_s1, %s686_s17  }
  0x24   :  { %s687_s20 = smov [#allocation7]   ;;  %s631_s24 = scalar_lea.hbm %s789_s4, 512 }
  0x25   :  { %s46_s21 = sshll.u32 %s687_s20, 4  ;;  %p632_p2 = scmp.ne.s32.totalorder %s789_s4, %s631_s24  ;;  %s47_s21 = int_to_ptr.vmem [resolvable:$true] %s46_s21 }
  0x26   :  { %p635_p3 = scmp.lt.u32.totalorder %s631_s24, %s789_s4 }
  0x28   :  { %p637_p4 = pnand %p635_p3, %p632_p2 }
  0x2a   :  { %640 = shalt.err (!%p637_p4)
}
  0x2b   :  { %s641_s29 = scalar_lea.vmem %s47_s21, 512  ;;  %p646_p6 = scmp.lt.s32.totalorder %s47_s21, %s47_s21 }
  0x2c   :  { %p642_p5 = scmp.ne.s32.totalorder %s47_s21, %s641_s29  ;;  %p647_p7 = scmp.lt.s32.totalorder %s641_s29, %s641_s29 }
  0x2e   :  { %p648_p8 = por %p647_p7, %p646_p6 }
  0x30   :  { %p649_p9 = pnand %p648_p8, %p642_p5 }
  0x32   :  { %652 = shalt.err (!%p649_p9)
}
  0x33   :  { %s688_s0 = smov 128   ;;  %s689_s30 = smov 8  }
  0x34   :  { %52 = dma.hbm_to_vmem [thread:$0]  %s789_s4, 512, %s47_s21, [#allocation6], %s688_s0, %s688_s0, %s689_s30  }
  0x35   :  { %675 = dma.done.wait [#allocation3], 768  }
  0x36   :  { %676 = vsyncadd [#allocation3], 4294966528 }
  0x37   :  { %677 = dma.done.wait [#allocation6], 3072  }
  0x38   :  { %678 = vsyncadd [#allocation6], 4294964224  ;;  %v551_v0 = vld [vmem:[#allocation5 + $0x40] sm:$0xff]   ;;  %v553_v2 = vld [vmem:[#allocation5 + $0x48] sm:$0xff]   ;;  %vm268_vm0 = vcmask 523264   ;;  %v389_v51 = vlaneseq }
  0x39   :  { %v552_v1 = vld [vmem:[#allocation5] sm:$0xff]   ;;  %495 = vmatprep.subr.bf16.mxu0 %v551_v0  ;;  %v554_v3 = vld [vmem:[#allocation5 + $0x8] sm:$0xff]   ;;  %v555_v4 = vld [vmem:[#allocation5 + $0x50] sm:$0xff]  }
  0x3a   :  { %496 = vmatpush3.bf16.msra.mxu0 %v552_v1  ;;  %v556_v5 = vld [vmem:[#allocation5 + $0x10] sm:$0xff]   ;;  %v557_v6 = vld [vmem:[#allocation5 + $0x58] sm:$0xff]   ;;  %v562_v8 = vld [vmem:[#allocation5 + $0x80] sm:$0xff]   ;;  %v390_v52 = vand.u32 127, %v389_v51 }
  0x3b   :  { %497 = vmatprep.subr.bf16.mxu0 %v553_v2  ;;  %v558_v7 = vld [vmem:[#allocation5 + $0x18] sm:$0xff]   ;;  %v559_v9 = vld [vmem:[#allocation5 + $0x60] sm:$0xff]   ;;  %529 = vmatprep.subr.bf16.mxu1 %v562_v8  ;;  %v565_v10 = vld [vmem:[#allocation5 + $0x88] sm:$0xff]  }
  0x3c   :  { %530 = vmatpush3.bf16.msra.mxu1 %v562_v8  ;;  %v560_v11 = vld [vmem:[#allocation5 + $0x20] sm:$0xff]   ;;  %v561_v12 = vld [vmem:[#allocation5 + $0x68] sm:$0xff]   ;;  %v568_v13 = vld [vmem:[#allocation5 + $0x90] sm:$0xff]   ;;  %vm391_vm1 = vcmp.lt.s32.totalorder %v390_v52, 32 }
  0x3d   :  { %531 = vmatprep.subr.bf16.mxu1 %v565_v10  ;;  %v563_v14 = vld [vmem:[#allocation5 + $0x28] sm:$0xff]   ;;  %v564_v15 = vld [vmem:[#allocation5 + $0x70] sm:$0xff]   ;;  %v573_v17 = vld [vmem:[#allocation5 + $0x98] sm:$0xff]  }
  0x3e   :  { %498 = vmatpush3.bf16.msra.mxu0 %v554_v3  ;;  %v572_v16 = vld [vmem:[#allocation2 + $0x4] ss:$12 sps:$4 sm:$0xff]   ;;  %v574_v18 = vld [vmem:[#allocation2 + $0x8] ss:$12 sps:$4 sm:$0xff]   ;;  %v575_v21 = vld [vmem:[#allocation2 + $0x20] ss:$12 sps:$4 sm:$0xff]  }
  0x3f   :  { %499 = vmatprep.subr.bf16.mxu0 %v555_v4  ;;  %307 = vmatprep.mubr.bf16.mxu0 %v572_v16  ;;  %v566_v19 = vld [vmem:[#allocation5 + $0x30] sm:$0xff]   ;;  %v567_v20 = vld [vmem:[#allocation5 + $0x78] sm:$0xff]  }
  0x40   :  { %532 = vmatpush3.bf16.msra.mxu1 %v565_v10  ;;  %537 = vmatprep.mubr.msk.bf16.mxu1 %vm268_vm0, %v574_v18  ;;  %v569_v22 = vld [vmem:[#allocation5 + $0x38] sm:$0xff]   ;;  %v578_v25 = vld [vmem:[#allocation2 + $0x18] ss:$12 sps:$4 sm:$0xff]   ;;  %v465_v32 = vld [vmem:[%s787_s2] ss:$0 sm:$0xff] }
  0x41   :  { %533 = vmatprep.subr.bf16.mxu1 %v568_v13  ;;  %v570_v23 = vld [vmem:[#allocation2] ss:$12 sps:$4 sm:$0xff]   ;;  %v576_v24 = vld [vmem:[#allocation2 + $0x1c] ss:$12 sps:$4 sm:$0xff]  }
  0x42   :  { %500 = vmatpush3.bf16.msra.mxu0 %v556_v5 }
  0x43   :  { %501 = vmatprep.subr.bf16.mxu0 %v557_v6 }
  0x44   :  { %534 = vmatpush3.bf16.msra.mxu1 %v568_v13 }
  0x45   :  { %535 = vmatprep.subr.bf16.mxu1 %v573_v17 }
  0x46   :  { %502 = vmatpush3.bf16.msra.mxu0 %v558_v7 }
  0x47   :  { %503 = vmatprep.subr.bf16.mxu0 %v559_v9 }
  0x48   :  { %536 = vmatpush3.bf16.msra.mxu1 %v573_v17 }
  0x4a   :  { %504 = vmatpush3.bf16.msra.mxu0 %v560_v11 }
  0x4b   :  { %505 = vmatprep.subr.bf16.mxu0 %v561_v12  ;;  %538 = vmatmul.mubr.msk.bf16.vlgmr.msra.gmra.mrb[0].mxu1 %vm268_vm0, %v575_v21 }
  0x4e   :  { %506 = vmatpush3.bf16.msra.mxu0 %v563_v14 }
  0x4f   :  { %507 = vmatprep.subr.bf16.mxu0 %v564_v15 }
  0x52   :  { %508 = vmatpush3.bf16.msra.mxu0 %v566_v19 }
  0x53   :  { %509 = vmatprep.subr.bf16.mxu0 %v567_v20 }
  0x56   :  { %510 = vmatpush3.bf16.msra.mxu0 %v569_v22  ;;  %v494_v22 = vld [vmem:[%s788_s3] ss:$0 sm:$0xff]  ;;  %s690_s3 = smov [#allocation8]  }
  0x57   :  { %s452_s10 = sshll.u32 %s690_s3, 4  ;;  %s453_s10 = int_to_ptr.vmem [resolvable:$true] %s452_s10 }
  0x58   :  { %s653_s11 = scalar_lea.vmem %s453_s10, 512  ;;  %p658_p11 = scmp.lt.s32.totalorder %s453_s10, %s453_s10 }
  0x59   :  { %308 = vmatmul.mubr.bf16.vlgmr.msra.gmra.mrb[0].mxu0 %v570_v23  ;;  %p654_p10 = scmp.ne.s32.totalorder %s453_s10, %s653_s11  ;;  %p659_p12 = scmp.lt.s32.totalorder %s653_s11, %s653_s11 }
  0x5a   :  { %315 = vmatprep.mubr.bf16.mxu0 %v576_v24  ;;  %v435_v24 = vld [vmem:[#allocation7] sm:$0xff] }
  0x5b   :  { %p660_p13 = por %p659_p12, %p658_p11 }
  0x5d   :  { %p661_p0 = pnand %p660_p13, %p654_p10 }
  0x61   :  { %316 = vmatmul.mubr.bf16.gmra.mrb[4].mxu0 %v578_v25 }
 0x11e   :  { %v539_v26 = vpop.f32.mrb[0].mxu1 }
 0x11f   :  { %v358_v27 = vpop.f32.mrb[1].mxu1 }
 0x120   :  { %v540_v28 = vpop.f32.mrb[2].mxu1 }
 0x121   :  { %v361_v29 = vpop.f32.mrb[3].mxu1 }
 0x12c   :  { %v511_v30 = vpop.f32.mrb[0].mxu0 }
 0x12d   :  { %v512_v31 = vpop.f32.mrb[1].mxu0 }
 0x12e   :  { %v513_v33 = vadd.f32 %v512_v31, %v511_v30  ;;  %v514_v34 = vpop.f32.mrb[2].mxu0 }
 0x12f   :  { %v515_v35 = vpop.f32.mrb[3].mxu0 }
 0x130   :  { %v516_v36 = vadd.f32 %v515_v35, %v514_v34  ;;  %v310_v37 = vadd.f32 %v513_v33, %v465_v32  ;;  %v437_v34 = vld [vmem:[#allocation7 + $0x10] sm:$0xff] }
 0x132   :  { %v359_v38 = vadd.f32 %v358_v27, %v310_v37  ;;  %v313_v39 = vadd.f32 %v516_v36, %v465_v32 }
 0x134   :  { %v362_v40 = vadd.f32 %v361_v29, %v313_v39  ;;  %v517_v41 = vpop.f32.mrb[4].mxu0  ;;  %373 = vadd.xlane.f32.xlu0 %v359_v38  ;;  %v436_v29 = vld [vmem:[#allocation7 + $0x8] sm:$0xff]  ;;  %v438_v39 = vld [vmem:[#allocation7 + $0x18] sm:$0xff] }
 0x135   :  { %v518_v42 = vpop.f32.mrb[5].mxu0 }
 0x136   :  { %v519_v43 = vadd.f32 %v518_v42, %v517_v41  ;;  %v520_v44 = vpop.f32.mrb[6].mxu0 }
 0x137   :  { %v521_v45 = vpop.f32.mrb[7].mxu0 }
 0x138   :  { %v318_v46 = vadd.f32 %v519_v43, %v465_v32  ;;  %v522_v47 = vadd.f32 %v521_v45, %v520_v44  ;;  %375 = vadd.xlane.f32.xlu0 %v362_v40 }
 0x13a   :  { %v321_v48 = vadd.f32 %v522_v47, %v465_v32  ;;  %v367_v49 = vadd.f32 %v539_v26, %v318_v46 }
 0x13c   :  { %377 = vadd.xlane.f32.xlu1 %v367_v49  ;;  %v370_v50 = vadd.f32 %v540_v28, %v321_v48 }
 0x140   :  { %379 = vadd.xlane.f32.xlu1 %v370_v50 }
 0x1c1   :  { %v374_v53 = vpop.xlane.xlu0 %373 }
 0x1c2   :  { %v381_v54 = vmul.f32 0.03125, %v374_v53 }
 0x1c4   :  { %v385_v55 = vsub.f32 %v359_v38, %v381_v54 }
 0x1c5   :  { %v376_v56 = vpop.xlane.xlu0 %375 }
 0x1c6   :  { %v382_v57 = vmul.f32 0.03125, %v376_v56  ;;  %v392_v58 = vsel %vm391_vm1, %v385_v55, 0.0 }
 0x1c7   :  { %v396_v59 = vmul.f32 %v392_v58, %v392_v58 }
 0x1c8   :  { %v386_v60 = vsub.f32 %v362_v40, %v382_v57 }
 0x1c9   :  { %v378_v61 = vpop.xlane.xlu1 %377  ;;  %400 = vadd.xlane.f32.xlu0 %v396_v59 }
 0x1ca   :  { %v383_v62 = vmul.f32 0.03125, %v378_v61  ;;  %v393_v63 = vsel %vm391_vm1, %v386_v60, 0.0 }
 0x1cb   :  { %v397_v0 = vmul.f32 %v393_v63, %v393_v63 }
 0x1cc   :  { %v387_v1 = vsub.f32 %v367_v49, %v383_v62 }
 0x1cd   :  { %v380_v2 = vpop.xlane.xlu1 %379  ;;  %402 = vadd.xlane.f32.xlu1 %v397_v0 }
 0x1ce   :  { %v384_v3 = vmul.f32 0.03125, %v380_v2  ;;  %v394_v4 = vsel %vm391_vm1, %v387_v1, 0.0 }
 0x1cf   :  { %v398_v5 = vmul.f32 %v394_v4, %v394_v4 }
 0x1d0   :  { %v388_v6 = vsub.f32 %v370_v50, %v384_v3 }
 0x1d1   :  { %404 = vadd.xlane.f32.xlu0 %v398_v5 }
 0x1d2   :  { %v395_v7 = vsel %vm391_vm1, %v388_v6, 0.0 }
 0x1d3   :  { %v399_v8 = vmul.f32 %v395_v7, %v395_v7 }
 0x1d5   :  { %406 = vadd.xlane.f32.xlu1 %v399_v8 }
 0x256   :  { %v401_v9 = vpop.xlane.xlu0 %400 }
 0x257   :  { %v408_v10 = vmul.f32 0.03125, %v401_v9 }
 0x259   :  { %v412_v11 = vadd.f32 1e-05, %v408_v10 }
 0x25a   :  { %v403_v12 = vpop.xlane.xlu1 %402 }
 0x25b   :  { %579 = vrsqrt.f32 %v412_v11  ;;  %v409_v13 = vmul.f32 0.03125, %v403_v12 }
 0x25d   :  { %v413_v14 = vadd.f32 1e-05, %v409_v13 }
 0x25e   :  { %v405_v15 = vpop.xlane.xlu0 %404 }
 0x25f   :  { %581 = vrsqrt.f32 %v413_v14  ;;  %v410_v16 = vmul.f32 0.03125, %v405_v15 }
 0x261   :  { %v414_v17 = vadd.f32 1e-05, %v410_v16 }
 0x262   :  { %v407_v18 = vpop.xlane.xlu1 %406 }
 0x263   :  { %583 = vrsqrt.f32 %v414_v17  ;;  %v411_v19 = vmul.f32 0.03125, %v407_v18 }
 0x265   :  { %v580_v20 = vpop.eup %579  ;;  %v415_v21 = vadd.f32 1e-05, %v411_v19 }
 0x266   :  { %v420_v23 = vmul.f32 %v580_v20, %v392_v58 }
 0x267   :  { %585 = vrsqrt.f32 %v415_v21 }
 0x268   :  { %v431_v25 = vmul.f32 %v494_v22, %v420_v23 }
 0x269   :  { %v582_v26 = vpop.eup %581 }
 0x26a   :  { %v421_v27 = vmul.f32 %v582_v26, %v393_v63  ;;  %v439_v28 = vadd.f32 %v435_v24, %v431_v25 }
 0x26c   :  { %v432_v30 = vmul.f32 %v494_v22, %v421_v27  ;;  %443 = vst [vmem:[#allocation8] sm:$0xff] %v439_v28 }
 0x26d   :  { %v584_v31 = vpop.eup %583 }
 0x26e   :  { %v422_v32 = vmul.f32 %v584_v31, %v394_v4  ;;  %v440_v33 = vadd.f32 %v436_v29, %v432_v30 }
 0x270   :  { %v433_v35 = vmul.f32 %v494_v22, %v422_v32  ;;  %444 = vst [vmem:[#allocation8 + $0x8] sm:$0xff] %v440_v33 }
 0x271   :  { %v586_v36 = vpop.eup %585 }
 0x272   :  { %v423_v37 = vmul.f32 %v586_v36, %v395_v7  ;;  %v441_v38 = vadd.f32 %v437_v34, %v433_v35 }
 0x274   :  { %v434_v40 = vmul.f32 %v494_v22, %v423_v37  ;;  %445 = vst [vmem:[#allocation8 + $0x10] sm:$0xff] %v441_v38 }
 0x276   :  { %v442_v41 = vadd.f32 %v438_v39, %v434_v40 }
 0x278   :  { %446 = vst [vmem:[#allocation8 + $0x18] sm:$0xff] %v442_v41 }
 0x279   :  { %664 = shalt.err (!%p661_p0)
}
 0x27a   :  { %s665_s14 = scalar_lea.hbm %s790_s5, 512 }
 0x27b   :  { %p666_p1 = scmp.ne.s32.totalorder %s790_s5, %s665_s14  ;;  %p669_p2 = scmp.lt.u32.totalorder %s665_s14, %s790_s5 }
 0x27d   :  { %p671_p3 = pnand %p669_p2, %p666_p1 }
 0x27f   :  { %674 = shalt.err (!%p671_p3)
}
 0x280   :  { %458 = dma.vmem_to_hbm [thread:$0]  %s453_s10, 512, %s790_s5, [#allocation4], %s688_s0, %s688_s0, %s689_s30  }
 0x281   :  { %679 = dma.done.wait [#allocation4], 512  }
 0x282   :  { %680 = vsyncadd [#allocation4], 4294966784 }
 0x283   :  { %462 = vsyncpa [#allocation3], 1 }
 0x284   :  { %463 = vsyncpa [#allocation6], 1 }
 0x285   :  { %464 = vsyncpa [#allocation4], 1 }

</bundles_post_ra>
